<compile_context>
chip_gen: v5e
topology: v5e:2x2
jax: 0.10.0
libtpu: 0.0.40
codegen_flags: <defaults>
</compile_context>

<pallas_src>
import math
import functools

import numpy as np
import jax
import jax.numpy as jnp
from jax import lax
from jax.experimental import pallas as pl
from jax.experimental.pallas import tpu as pltpu


def _round_up(v, m):
    return ((v + m - 1) // m) * m


def _sine_layer_kernel(x_ref, w_ref, b_ref, o_ref, *, precision):
    # x: (TB, IN_p); w: (IN_p, TN) -- pre-transposed, omega-scaled; b: (1, TN) f32.
    acc = jnp.dot(x_ref[...], w_ref[...],
                  preferred_element_type=jnp.float32,
                  precision=precision)                       # (TB, TN) f32 on MXU
    o_ref[...] = jnp.sin(acc + b_ref[...]).astype(o_ref.dtype)


def sine_layer_forward(x, weight, bias, omega_0=30.0, *,
                       block_b=4096, block_n=None,
                       operand_dtype=None,
                       vmem_tile_budget_bytes=24 * 1024 * 1024):
    """y = sin(omega_0 * (x @ weight.T + bias)).

    x: (B, in_features); weight: (out_features, in_features) [PyTorch layout];
    bias: (out_features,).  Returns (B, out_features) in x.dtype.

    operand_dtype: optional streaming dtype for x / W (e.g. jnp.bfloat16);
    accumulation, bias add and sin remain f32.
    vmem_tile_budget_bytes: cap on the double-buffered tile working set
    (default 24 MiB -> safe on v7x's 64 MiB VMEM; raise on v5e/v6e)."""
    B, IN = x.shape
    OUT, IN_w = weight.shape
    assert IN == IN_w
    assert bias.shape == (OUT,)

    out_dtype = x.dtype
    op_dtype = jnp.dtype(operand_dtype) if operand_dtype is not None else jnp.dtype(x.dtype)
    op_item = op_dtype.itemsize
    out_item = jnp.dtype(out_dtype).itemsize

    IN_p = _round_up(IN, 128)           # contraction dim (zero-padded: required)
    OUT_p = _round_up(OUT, 128)         # output lane dim  -> dense vst

    # ---- OUT tile: prefer a single lane-dense tile (nj == 1) so the large
    #      tensor (x) is streamed from HBM exactly once. -----------------------
    if block_n is None:
        tn_cap = OUT_p
    else:
        tn_cap = max(128, (min(block_n, OUT_p) // 128) * 128)   # clamp to 128-multiple
    TN = 128
    for cand in range(tn_cap, 127, -128):
        if OUT_p % cand == 0:
            TN = cand
            break

    # ---- batch tile: biggest multiple of 256 under block_b whose
    #      double-buffered working set fits the VMEM tile budget. --------------
    def tile_bytes(tb):
        # 2x for BlockSpec double-buffering of x / W / b inputs and the y output.
        return 2 * ((tb * IN_p + IN_p * TN) * op_item + TN * 4 + tb * TN * out_item)

    tb_cap = min(block_b, _round_up(B, 8))
    if tb_cap >= 256:
        TB = (tb_cap // 256) * 256
        while TB > 256 and tile_bytes(TB) > vmem_tile_budget_bytes:
            TB -= 256
    else:
        TB = _round_up(tb_cap, 8)
    while TB > 8 and tile_bytes(TB) > vmem_tile_budget_bytes:
        TB -= 8

    nb = pl.cdiv(B, TB)    # boundary block handles B % TB (masked stores)
    nj = OUT_p // TN

    # ---- prepare operands (all parameter work is on a tiny (OUT, IN) tensor) --
    # Zero-pad ONLY the contraction dim of x (required for correctness).
    xp = x if IN_p == IN else jnp.pad(x, ((0, 0), (0, IN_p - IN)))
    xp = xp.astype(op_dtype)

    # Fold omega_0 into W and b; pre-transpose once so the kernel's RHS
    # contraction dim is the sublane dim (no per-step transpose in the kernel).
    w_t = (weight.astype(jnp.float32) * float(omega_0)).T            # (IN, OUT)
    if IN_p != IN or OUT_p != OUT:
        w_t = jnp.pad(w_t, ((0, IN_p - IN), (0, OUT_p - OUT)))
    w_t = w_t.astype(op_dtype)

    bp = bias.astype(jnp.float32) * float(omega_0)
    if OUT_p != OUT:
        bp = jnp.pad(bp, (0, OUT_p - OUT))
    bp = bp.reshape(1, OUT_p)                                        # f32 always

    precision = lax.Precision.HIGHEST if op_dtype == jnp.float32 else None
    kernel = functools.partial(_sine_layer_kernel, precision=precision)

    cost = pl.CostEstimate(
        flops=2 * B * IN_p * OUT_p,
        transcendentals=B * OUT_p,
        bytes_accessed=(B * IN_p * op_item * nj        # x streamed once per OUT tile
                        + IN_p * OUT_p * op_item
                        + OUT_p * 4
                        + B * OUT_p * out_item),
    )

    vmem_limit = int(min(48 * 1024 * 1024,
                         max(32 * 1024 * 1024,
                             tile_bytes(TB) + 8 * 1024 * 1024)))

    yp = pl.pallas_call(
        kernel,
        out_shape=jax.ShapeDtypeStruct((B, OUT_p), out_dtype),
        grid_spec=pltpu.PrefetchScalarGridSpec(
            num_scalar_prefetch=0,
            # OUT tiles outer (usually nj == 1), batch tiles inner: the W / b
            # blocks stay VMEM-resident across the whole batch sweep.
            grid=(nj, nb),
            in_specs=[
                pl.BlockSpec((TB, IN_p), lambda j, i: (i, 0)),   # x tile
                pl.BlockSpec((IN_p, TN), lambda j, i: (0, j)),   # W^T tile
                pl.BlockSpec((1, TN),    lambda j, i: (0, j)),   # bias tile
            ],
            out_specs=pl.BlockSpec((TB, TN), lambda j, i: (i, j)),
        ),
        compiler_params=pltpu.CompilerParams(
            dimension_semantics=("parallel", "parallel"),
            vmem_limit_bytes=vmem_limit),
        cost_estimate=cost,
    )(xp, w_t, bp)

    return yp if OUT_p == OUT else yp[:, :OUT]


def init_sine_layer_params(key, in_features, out_features, is_first=False,
                           omega_0=30.0, dtype=jnp.float32):
    """Deterministic SIREN init (matches the PyTorch __init__ ranges)."""
    k_w, k_b = jax.random.split(key)
    if is_first:
        bound_w = 1.0 / in_features
    else:
        bound_w = math.sqrt(6.0 / in_features) / omega_0
    weight = jax.random.uniform(k_w, (out_features, in_features),
                                minval=-bound_w, maxval=bound_w, dtype=dtype)
    # nn.Linear default bias init: U(-1/sqrt(in_features), 1/sqrt(in_features))
    bound_b = 1.0 / math.sqrt(in_features)
    bias = jax.random.uniform(k_b, (out_features,),
                              minval=-bound_b, maxval=bound_b, dtype=dtype)
    return weight, bias


def _ref_forward(x, w, b, omega):
    x64 = np.asarray(x, np.float64)
    w64 = np.asarray(w, np.float64)
    b64 = np.asarray(b, np.float64)
    return np.sin(omega * (x64 @ w64.T + b64))


if __name__ == "__main__":
    key = jax.random.PRNGKey(0)
    k1, k2, k3, k4, k5, k6 = jax.random.split(key, 6)
    omega_0 = 30.0

    # 1) Hidden-layer style: batch=8, in=32, out=32 (f32 path).
    x1 = jax.random.normal(k1, (8, 32), dtype=jnp.float32)
    w1, b1 = init_sine_layer_params(k2, 32, 32, is_first=False, omega_0=omega_0)
    y1 = jax.block_until_ready(sine_layer_forward(x1, w1, b1, omega_0=omega_0))
    assert y1.shape == (8, 32)
    assert np.allclose(np.asarray(y1), _ref_forward(x1, w1, b1, omega_0),
                       atol=1e-4), "hidden-layer f32 mismatch"

    # 2) First-layer style: non-aligned batch, in_features=2 (K padded to 128).
    x2 = jax.random.normal(k3, (300, 2), dtype=jnp.float32)
    w2, b2 = init_sine_layer_params(k4, 2, 32, is_first=True, omega_0=omega_0)
    y2 = jax.block_until_ready(sine_layer_forward(x2, w2, b2, omega_0=omega_0))
    assert y2.shape == (300, 32)
    assert np.allclose(np.asarray(y2), _ref_forward(x2, w2, b2, omega_0),
                       atol=1e-4), "first-layer f32 mismatch"

    # 3) Multi-tile batch with a ragged last block + non-128-multiple OUT.
    x3 = jax.random.normal(k5, (777, 32), dtype=jnp.float32)
    w3, b3 = init_sine_layer_params(k6, 32, 48, is_first=False, omega_0=omega_0)
    y3 = jax.block_until_ready(
        sine_layer_forward(x3, w3, b3, omega_0=omega_0, block_b=256))
    assert y3.shape == (777, 48)
    assert np.allclose(np.asarray(y3), _ref_forward(x3, w3, b3, omega_0),
                       atol=1e-4), "ragged-batch f32 mismatch"

    # 4) Opt-in bf16 operand streaming (f32 accumulation / bias / sin).
    y1_bf16 = jax.block_until_ready(
        sine_layer_forward(x1, w1, b1, omega_0=omega_0,
                           operand_dtype=jnp.bfloat16))
    assert y1_bf16.shape == (8, 32)
    assert np.allclose(np.asarray(y1_bf16), _ref_forward(x1, w1, b1, omega_0),
                       atol=1e-1), "bf16-streaming mismatch"

    print("KERNEL_OK")
</pallas_src>

<mosaic_0001>
module attributes {stable_mosaic.version = 11 : i64} {
  func.func @_sine_layer_kernel(%arg0: i32, %arg1: i32, %arg2: memref<8x128xf32, #tpu.memory_space<vmem>>, %arg3: memref<128x128xf32, #tpu.memory_space<vmem>>, %arg4: memref<1x128xf32, #tpu.memory_space<vmem>>, %arg5: memref<8x128xf32, #tpu.memory_space<vmem>>) attributes {dimension_semantics = [#tpu.dimension_semantics<parallel>, #tpu.dimension_semantics<parallel>], iteration_bounds = array<i64: 1, 1>, scalar_prefetch = 0 : i64, scratch_operands = 0 : i64, tpu.core_type = #tpu.core_type<tc>, window_params = [{transform_indices = @transform_0, window_bounds = array<i64: 8, 128>}, {transform_indices = @transform_1, window_bounds = array<i64: 128, 128>}, {transform_indices = @transform_2, window_bounds = array<i64: 1, 128>}, {transform_indices = @transform_3, window_bounds = array<i64: 8, 128>}]} {
    %c0 = arith.constant 0 : index
    %c0_0 = arith.constant 0 : index
    %0 = vector.load %arg2[%c0, %c0_0] : memref<8x128xf32, #tpu.memory_space<vmem>>, vector<8x128xf32>
    %c0_1 = arith.constant 0 : index
    %c0_2 = arith.constant 0 : index
    %1 = vector.load %arg3[%c0_1, %c0_2] : memref<128x128xf32, #tpu.memory_space<vmem>>, vector<128x128xf32>
    %cst = arith.constant dense<0.000000e+00> : vector<8x128xf32>
    %2 = tpu.matmul %0, %1, %cst {dimension_numbers = #tpu.dot_dimension_numbers<[1], [0], [0], [1], [0, 0, 1, 1], [], []>, precision = #tpu.contract_precision<fp32>} : vector<8x128xf32>, vector<128x128xf32>, vector<8x128xf32> -> vector<8x128xf32>
    %c0_3 = arith.constant 0 : index
    %c0_4 = arith.constant 0 : index
    %3 = vector.load %arg4[%c0_3, %c0_4] : memref<1x128xf32, #tpu.memory_space<vmem>>, vector<1x128xf32>
    %4 = vector.broadcast %3 : vector<1x128xf32> to vector<8x128xf32>
    %5 = arith.addf %2, %4 : vector<8x128xf32>
    %6 = math.sin %5 : vector<8x128xf32>
    %c0_5 = arith.constant 0 : index
    %c0_6 = arith.constant 0 : index
    %7 = vector.load %arg5[%c0_5, %c0_6] : memref<8x128xf32, #tpu.memory_space<vmem>>, vector<8x128xf32>
    tpu.vector_store %arg5[%c0_5, %c0_6], %6 {strides = array<i32>} : memref<8x128xf32, #tpu.memory_space<vmem>>, vector<8x128xf32>,
    return
  }
  func.func @transform_0(%arg0: i32, %arg1: i32) -> (i32, i32) {
    %c0_i32 = arith.constant 0 : i32
    %c0_i32_0 = arith.constant 0 : i32
    return %arg1, %c0_i32 : i32, i32
  }
  func.func @transform_1(%arg0: i32, %arg1: i32) -> (i32, i32) {
    %c0_i32 = arith.constant 0 : i32
    %c0_i32_0 = arith.constant 0 : i32
    return %c0_i32, %arg0 : i32, i32
  }
  func.func @transform_2(%arg0: i32, %arg1: i32) -> (i32, i32) {
    %c0_i32 = arith.constant 0 : i32
    %c0_i32_0 = arith.constant 0 : i32
    return %c0_i32, %arg0 : i32, i32
  }
  func.func @transform_3(%arg0: i32, %arg1: i32) -> (i32, i32) {
    %c0_i32 = arith.constant 0 : i32
    return %arg1, %arg0 : i32, i32
  }
}

</mosaic_0001>

<bundles_post_ra>
// kernel: tpu_custom_call.1
= control target key start
LH: loop header
LB: loop body
LE: loop exit
PB: predicated region body
PF: predicated region fallthrough
CT: control target
= control target key end

     0   :  { %8 = vsyncpa [#allocation3], 0  ;;  %s1013_s0 = inlined_call_operand.hbm [shape: f32[8,128], index: 0, kind: input, shape index: {}]   ;;  %s1014_s1 = inlined_call_operand.hbm [shape: f32[128,128], index: 1, kind: input, shape index: {}]   ;;  %s1015_s2 = inlined_call_operand.vmem [shape: f32[1,128], index: 2, kind: input, shape index: {}]   ;;  %s1016_s3 = inlined_call_operand.hbm [shape: f32[8,128], index: 3, kind: output, shape index: {}]  }
   0x1   :  { %9 = vsyncpa [#allocation6], 0 }
   0x2   :  { %10 = vsyncpa [#allocation4], 0  ;;  %s16_s14 = sshll.u32 %s1013_s0, 4  ;;  %s675_s15 = smov [#allocation2]   ;;  %s17_s14 = int_to_ptr.hbm [resolvable:$true] %s16_s14 }
   0x3   :  { %s18_s16 = sshll.u32 %s675_s15, 4  ;;  %s26_s19 = sshll.u32 %s1014_s1, 4  ;;  %s19_s16 = int_to_ptr.vmem [resolvable:$true] %s18_s16  ;;  %s27_s19 = int_to_ptr.hbm [resolvable:$true] %s26_s19 }
   0x4   :  { %21 = dma.hbm_to_vmem [thread:$0]  %s17_s14, 128, %s19_s16, [#allocation3]  }
   0x5   :  { %s676_s20 = smov [#allocation5]   ;;  %s677_s22 = smov 128  }
   0x6   :  { %s28_s21 = sshll.u32 %s676_s20, 4  ;;  %s678_s23 = smov 8   ;;  %s29_s21 = int_to_ptr.vmem [resolvable:$true] %s28_s21 }
   0x7   :  { %34 = dma.hbm_to_vmem [thread:$0]  %s27_s19, 2048, %s29_s21, [#allocation6], %s677_s22, %s677_s22, %s678_s23  }
   0x8   :  { %669 = dma.done.wait [#allocation3], 128  }
   0x9   :  { %670 = vsyncadd [#allocation3], 4294967168 }
   0xa   :  { %671 = dma.done.wait [#allocation6], 2048  }
   0xb   :  { %672 = vsyncadd [#allocation6], 4294965248  ;;  %v61_v0 = vld [vmem:[#allocation5 + $0x78] sm:$0xff]  ;;  %v60_v1 = vld [vmem:[#allocation5 + $0x70] sm:$0xff]  ;;  %s570_s27 = sshll.u32 %s1016_s3, 4  ;;  %s571_s27 = int_to_ptr.hbm [resolvable:$true] %s570_s27 }
   0xc   :  { %v59_v2 = vld [vmem:[#allocation5 + $0x68] sm:$0xff]  ;;  %v713_v3 = vand.u32 4294901760, %v61_v0  ;;  %v715_v4 = vand.u32 4294901760, %v60_v1  ;;  %v58_v6 = vld [vmem:[#allocation5 + $0x60] sm:$0xff]  ;;  %v57_v7 = vld [vmem:[#allocation5 + $0x58] sm:$0xff] }
   0xd   :  { %v717_v5 = vand.u32 4294901760, %v59_v2  ;;  %v56_v8 = vld [vmem:[#allocation5 + $0x50] sm:$0xff]  ;;  %v719_v9 = vand.u32 4294901760, %v58_v6  ;;  %v721_v10 = vand.u32 4294901760, %v57_v7  ;;  %v55_v12 = vld [vmem:[#allocation5 + $0x48] sm:$0xff]  ;;  %v54_v13 = vld [vmem:[#allocation5 + $0x40] sm:$0xff] }
   0xe   :  { %v723_v11 = vand.u32 4294901760, %v56_v8  ;;  %67 = vmatpush.msra.mxu0 %v713_v3  ;;  %v727_v14 = vsub.f32 %v61_v0, %v713_v3  ;;  %v730_v15 = vsub.f32 %v60_v1, %v715_v4  ;;  %v735_v17 = vand.u32 4294901760, %v55_v12  ;;  %263 = vmatpush.msra.mxu3 %v713_v3  ;;  %v53_v21 = vld [vmem:[#allocation5 + $0x38] sm:$0xff]  ;;  %v52_v34 = vld [vmem:[#allocation5 + $0x30] sm:$0xff]  ;;  %v51_v35 = vld [vmem:[#allocation5 + $0x28] sm:$0xff] }
   0xf   :  { %v733_v16 = vsub.f32 %v59_v2, %v717_v5  ;;  %v739_v18 = vsub.f32 %v58_v6, %v719_v9  ;;  %v742_v19 = vsub.f32 %v57_v7, %v721_v10  ;;  %v744_v20 = vand.u32 4294901760, %v54_v13  ;;  %v50_v42 = vld [vmem:[#allocation5 + $0x20] sm:$0xff]  ;;  %v49_v47 = vld [vmem:[#allocation5 + $0x18] sm:$0xff]  ;;  %v48_v53 = vld [vmem:[#allocation5 + $0x10] sm:$0xff] }
  0x10   :  { %69 = vmatpush.msra.mxu0 %v715_v4  ;;  %v109_v22 = vand.u32 4294901760, %v727_v14  ;;  %v115_v23 = vand.u32 4294901760, %v730_v15  ;;  %v751_v25 = vsub.f32 %v56_v8, %v723_v11  ;;  %210 = vmatpush.msra.mxu2 %v727_v14  ;;  %v757_v28 = vsub.f32 %v55_v12, %v735_v17  ;;  %v47_v61 = vld [vmem:[#allocation5 + $0x8] sm:$0xff]  ;;  %v46_v2 = vld [vmem:[#allocation5] sm:$0xff] }
  0x11   :  { %v121_v24 = vand.u32 4294901760, %v733_v16  ;;  %v127_v26 = vand.u32 4294901760, %v739_v18  ;;  %v133_v27 = vand.u32 4294901760, %v742_v19  ;;  %265 = vmatpush.msra.mxu3 %v715_v4  ;;  %v770_v32 = vand.u32 4294901760, %v53_v21 }
  0x12   :  { %v110_v29 = vsub.f32 %v727_v14, %v109_v22  ;;  %71 = vmatpush.msra.mxu0 %v717_v5  ;;  %v116_v30 = vsub.f32 %v730_v15, %v115_v23  ;;  %213 = vmatpush.msra.mxu2 %v730_v15  ;;  %v774_v33 = vsub.f32 %v54_v13, %v744_v20  ;;  %v139_v39 = vand.u32 4294901760, %v751_v25 }
  0x13   :  { %v122_v31 = vsub.f32 %v733_v16, %v121_v24  ;;  %267 = vmatpush.msra.mxu3 %v717_v5  ;;  %v128_v38 = vsub.f32 %v739_v18, %v127_v26  ;;  %v134_v40 = vsub.f32 %v742_v19, %v133_v27  ;;  %v145_v41 = vand.u32 4294901760, %v757_v28 }
  0x14   :  { %v111_v36 = vand.u32 4294901760, %v110_v29  ;;  %v117_v37 = vand.u32 4294901760, %v116_v30  ;;  %73 = vmatpush.msra.mxu0 %v719_v9  ;;  %216 = vmatpush.msra.mxu2 %v733_v16  ;;  %v789_v44 = vand.u32 4294901760, %v52_v34  ;;  %v792_v45 = vsub.f32 %v53_v21, %v770_v32  ;;  %v45_v29 = vld [vmem:[#allocation2] sm:$0xff] }
  0x15   :  { %269 = vmatpush.msra.mxu3 %v719_v9  ;;  %v123_v43 = vand.u32 4294901760, %v122_v31  ;;  %v794_v46 = vand.u32 4294901760, %v51_v35  ;;  %v151_v48 = vand.u32 4294901760, %v774_v33  ;;  %v129_v49 = vand.u32 4294901760, %v128_v38 }
  0x16   :  { %112 = vmatpush.msra.mxu1 %v111_v36  ;;  %75 = vmatpush.msra.mxu0 %v721_v10  ;;  %v140_v50 = vsub.f32 %v751_v25, %v139_v39  ;;  %v804_v51 = vsub.f32 %v52_v34, %v789_v44  ;;  %v806_v52 = vand.u32 4294901760, %v50_v42  ;;  %v808_v54 = vand.u32 4294901760, %v49_v47 }
  0x17   :  { %219 = vmatpush.msra.mxu2 %v739_v18  ;;  %271 = vmatpush.msra.mxu3 %v721_v10  ;;  %v135_v55 = vand.u32 4294901760, %v134_v40  ;;  %v146_v56 = vsub.f32 %v757_v28, %v145_v41  ;;  %v157_v57 = vand.u32 4294901760, %v792_v45  ;;  %v818_v58 = vsub.f32 %v51_v35, %v794_v46 }
  0x18   :  { %118 = vmatpush.msra.mxu1 %v117_v37  ;;  %77 = vmatpush.msra.mxu0 %v723_v11  ;;  %v152_v59 = vsub.f32 %v774_v33, %v151_v48  ;;  %v823_v60 = vand.u32 4294901760, %v48_v53  ;;  %v141_v62 = vand.u32 4294901760, %v140_v50  ;;  %v163_v63 = vand.u32 4294901760, %v804_v51 }
  0x19   :  { %222 = vmatpush.msra.mxu2 %v742_v19  ;;  %273 = vmatpush.msra.mxu3 %v723_v11  ;;  %v830_v0 = vsub.f32 %v50_v42, %v806_v52  ;;  %v833_v1 = vsub.f32 %v49_v47, %v808_v54  ;;  %v147_v6 = vand.u32 4294901760, %v146_v56  ;;  %v158_v7 = vsub.f32 %v792_v45, %v157_v57 }
  0x1a   :  { %124 = vmatpush.msra.mxu1 %v123_v43  ;;  %79 = vmatpush.msra.mxu0 %v735_v17  ;;  %v169_v8 = vand.u32 4294901760, %v818_v58  ;;  %v842_v12 = vand.u32 4294901760, %v47_v61  ;;  %v153_v13 = vand.u32 4294901760, %v152_v59  ;;  %v845_v21 = vsub.f32 %v48_v53, %v823_v60 }
  0x1b   :  { %225 = vmatpush.msra.mxu2 %v751_v25  ;;  %275 = vmatpush.msra.mxu3 %v735_v17  ;;  %v164_v30 = vsub.f32 %v804_v51, %v163_v63  ;;  %v175_v31 = vand.u32 4294901760, %v830_v0  ;;  %v854_v34 = vand.u32 4294901760, %v46_v2  ;;  %v856_v35 = vand.u32 4294901760, %v45_v29 }
  0x1c   :  { %130 = vmatpush.msra.mxu1 %v129_v49  ;;  %81 = vmatpush.msra.mxu0 %v744_v20  ;;  %v181_v36 = vand.u32 4294901760, %v833_v1  ;;  %v159_v37 = vand.u32 4294901760, %v158_v7  ;;  %v170_v38 = vsub.f32 %v818_v58, %v169_v8  ;;  %v866_v40 = vsub.f32 %v47_v61, %v842_v12 }
  0x1d   :  { %228 = vmatpush.msra.mxu2 %v757_v28  ;;  %277 = vmatpush.msra.mxu3 %v744_v20  ;;  %v99_v42 = vsub.f32 %v45_v29, %v856_v35  ;;  %v165_v43 = vand.u32 4294901760, %v164_v30  ;;  %v176_v47 = vsub.f32 %v830_v0, %v175_v31  ;;  %v187_v49 = vand.u32 4294901760, %v845_v21 }
  0x1e   :  { %136 = vmatpush.msra.mxu1 %v135_v55  ;;  %83 = vmatpush.msra.mxu0 %v770_v32  ;;  %v877_v50 = vsub.f32 %v46_v2, %v854_v34  ;;  %v171_v53 = vand.u32 4294901760, %v170_v38  ;;  %v182_v55 = vsub.f32 %v833_v1, %v181_v36  ;;  %v193_v56 = vand.u32 4294901760, %v866_v40 }
  0x1f   :  { %231 = vmatpush.msra.mxu2 %v774_v33  ;;  %279 = vmatpush.msra.mxu3 %v770_v32  ;;  %v100_v59 = vand.u32 4294901760, %v99_v42  ;;  %v177_v61 = vand.u32 4294901760, %v176_v47 }
  0x20   :  { %142 = vmatpush.msra.mxu1 %v141_v62  ;;  %85 = vmatpush.msra.mxu0 %v789_v44  ;;  %v188_v62 = vsub.f32 %v845_v21, %v187_v49  ;;  %v199_v2 = vand.u32 4294901760, %v877_v50  ;;  %v194_v7 = vsub.f32 %v866_v40, %v193_v56 }
  0x21   :  { %234 = vmatpush.msra.mxu2 %v792_v45  ;;  %281 = vmatpush.msra.mxu3 %v789_v44 }
  0x22   :  { %148 = vmatpush.msra.mxu1 %v147_v6  ;;  %87 = vmatpush.msra.mxu0 %v794_v46  ;;  %v183_v6 = vand.u32 4294901760, %v182_v55  ;;  %v189_v29 = vand.u32 4294901760, %v188_v62  ;;  %v200_v30 = vsub.f32 %v877_v50, %v199_v2 }
  0x23   :  { %237 = vmatpush.msra.mxu2 %v804_v51  ;;  %283 = vmatpush.msra.mxu3 %v794_v46 }
  0x24   :  { %154 = vmatpush.msra.mxu1 %v153_v13  ;;  %89 = vmatpush.msra.mxu0 %v806_v52  ;;  %v101_v13 = vsub.f32 %v99_v42, %v100_v59 }
  0x25   :  { %240 = vmatpush.msra.mxu2 %v818_v58  ;;  %285 = vmatpush.msra.mxu3 %v806_v52  ;;  %v682_v58 = vmov 2102212464  }
  0x26   :  { %160 = vmatpush.msra.mxu1 %v159_v37  ;;  %91 = vmatpush.msra.mxu0 %v808_v54  ;;  %v195_v37 = vand.u32 4294901760, %v194_v7  ;;  %v102_v38 = vand.u32 4294901760, %v101_v13 }
  0x27   :  { %243 = vmatpush.msra.mxu2 %v830_v0  ;;  %287 = vmatpush.msra.mxu3 %v808_v54  ;;  %v683_v0 = vmov 920167782  }
  0x28   :  { %166 = vmatpush.msra.mxu1 %v165_v43  ;;  %93 = vmatpush.msra.mxu0 %v823_v60  ;;  %v201_v43 = vand.u32 4294901760, %v200_v30 }
  0x29   :  { %246 = vmatpush.msra.mxu2 %v833_v1  ;;  %289 = vmatpush.msra.mxu3 %v823_v60 }
  0x2a   :  { %172 = vmatpush.msra.mxu1 %v171_v53  ;;  %95 = vmatpush.msra.mxu0 %v842_v12 }
  0x2b   :  { %249 = vmatpush.msra.mxu2 %v845_v21  ;;  %291 = vmatpush.msra.mxu3 %v842_v12 }
  0x2c   :  { %178 = vmatpush.msra.mxu1 %v177_v61  ;;  %97 = vmatpush.msra.mxu0 %v854_v34 }
  0x2d   :  { %252 = vmatpush.msra.mxu2 %v866_v40  ;;  %293 = vmatpush.msra.mxu3 %v854_v34 }
  0x2e   :  { %304 = vmatpush.msrb.mxu0 %v109_v22  ;;  %184 = vmatpush.msra.mxu1 %v183_v6 }
  0x2f   :  { %255 = vmatpush.msra.mxu2 %v877_v50  ;;  %297 = vmatmul.f32.vlgmr.msra.gmra.mxu3 %v100_v59 }
  0x30   :  { %308 = vmatpush.msrb.mxu0 %v115_v23  ;;  %190 = vmatpush.msra.mxu1 %v189_v29 }
  0x31   :  { %258 = vmatmul.f32.vlgmr.msra.gmra.mxu2 %v99_v42  ;;  %103 = vmatmul.f32.vlgmr.msra.gmra.mxu0 %v102_v38 }
  0x32   :  { %312 = vmatpush.msrb.mxu0 %v121_v24  ;;  %196 = vmatpush.msra.mxu1 %v195_v37 }
  0x34   :  { %316 = vmatpush.msrb.mxu0 %v127_v26  ;;  %202 = vmatpush.msra.mxu1 %v201_v43 }
  0x35   :  { %204 = vmatmul.f32.vlgmr.msra.gmra.mxu1 %v856_v35 }
  0x36   :  { %371 = vmatpush.msrb.mxu1 %v713_v3  ;;  %320 = vmatpush.msrb.mxu0 %v133_v27  ;;  %v596_v3 = vld [vmem:[%s1015_s2] ss:$0 sm:$0xff]  ;;  %s686_s2 = smov [#allocation7]  }
  0x37   :  { %s568_s24 = sshll.u32 %s686_s2, 4  ;;  %s569_s24 = int_to_ptr.vmem [resolvable:$true] %s568_s24 }
  0x38   :  { %373 = vmatpush.msrb.mxu1 %v715_v4  ;;  %324 = vmatpush.msrb.mxu0 %v139_v39 }
  0x3a   :  { %375 = vmatpush.msrb.mxu1 %v717_v5  ;;  %328 = vmatpush.msrb.mxu0 %v145_v41 }
  0x3c   :  { %377 = vmatpush.msrb.mxu1 %v719_v9  ;;  %332 = vmatpush.msrb.mxu0 %v151_v48 }
  0x3e   :  { %379 = vmatpush.msrb.mxu1 %v721_v10  ;;  %336 = vmatpush.msrb.mxu0 %v157_v57 }
  0x40   :  { %381 = vmatpush.msrb.mxu1 %v723_v11  ;;  %340 = vmatpush.msrb.mxu0 %v163_v63 }
  0x42   :  { %383 = vmatpush.msrb.mxu1 %v735_v17  ;;  %344 = vmatpush.msrb.mxu0 %v169_v8 }
  0x44   :  { %385 = vmatpush.msrb.mxu1 %v744_v20  ;;  %348 = vmatpush.msrb.mxu0 %v175_v31 }
  0x46   :  { %387 = vmatpush.msrb.mxu1 %v770_v32  ;;  %352 = vmatpush.msrb.mxu0 %v181_v36 }
  0x48   :  { %389 = vmatpush.msrb.mxu1 %v789_v44  ;;  %356 = vmatpush.msrb.mxu0 %v187_v49  ;;  %v679_v44 = vmov 683565275  }
  0x4a   :  { %391 = vmatpush.msrb.mxu1 %v794_v46  ;;  %360 = vmatpush.msrb.mxu0 %v193_v56  ;;  %v680_v46 = vmov 2475754826  }
  0x4c   :  { %393 = vmatpush.msrb.mxu1 %v806_v52  ;;  %364 = vmatpush.msrb.mxu0 %v199_v2  ;;  %v681_v52 = vmov 2131351028  }
  0x4d   :  { %366 = vmatmul.f32.vlgmr.msrb.gmra.mxu0 %v856_v35 }
  0x4e   :  { %395 = vmatpush.msrb.mxu1 %v808_v54 }
  0x50   :  { %397 = vmatpush.msrb.mxu1 %v823_v60 }
  0x52   :  { %399 = vmatpush.msrb.mxu1 %v842_v12  ;;  %v684_v12 = vmov 1326507024  }
  0x54   :  { %401 = vmatpush.msrb.mxu1 %v854_v34 }
  0x55   :  { %403 = vmatmul.f32.vlgmr.msrb.gmra.mxu1 %v856_v35 }
  0xae   :  { %v104_v4 = vpop.f32.mrf.mxu0 }
  0xaf   :  { %v105_v5 = vadd.f32 %v596_v3, %v104_v4 }
  0xb2   :  { %v205_v9 = vpop.f32.mrf.mxu1  ;;  %v298_v15 = vpop.f32.mrf.mxu3 }
  0xb3   :  { %v206_v10 = vadd.f32 %v205_v9, %v105_v5 }
  0xb4   :  { %v259_v11 = vpop.f32.mrf.mxu2 }
  0xb5   :  { %v260_v14 = vadd.f32 %v259_v11, %v206_v10 }
  0xb7   :  { %v299_v16 = vadd.f32 %v298_v15, %v260_v14 }
  0xca   :  { %v367_v17 = vpop.f32.mrf.mxu0 }
  0xcb   :  { %v368_v18 = vadd.f32 %v367_v17, %v299_v16  ;;  %v685_v16 = vmov 0  }
  0xd2   :  { %v404_v19 = vpop.f32.mrf.mxu1 }
  0xd3   :  { %v954_v20 = vadd.f32 %v404_v19, %v368_v18 }
  0xd5   :  { %v410_v22 = vand.u32 2139095040, %v954_v20  ;;  %v407_v25 = vand.u32 2147483647, %v954_v20  ;;  %vm409_vm12 = vcmp.lt.s32.totalorder %v954_v20, 0 }
  0xd7   :  { %v411_v23 = vshrl.u32 %v410_v22, 23  ;;  %v414_v27 = vand.u32 8388607, %v407_v25  ;;  %vm408_vm13 = vcmp.le.f32.partialorder %v407_v25, 0.7853982 }
  0xd9   :  { %v581_v24 = vadd.s32 4294967169, %v411_v23  ;;  %v415_v39 = vor.u32 8388608, %v414_v27 }
  0xdb   :  { %v417_v26 = vadd.s32 1, %v581_v24  ;;  %v971_v42 = vshll.u32 %v415_v39, 8 }
  0xdd   :  { %vm418_vm0 = vcmp.gt.s32.totalorder %v417_v26, 0  ;;  %v456_v62 = vand.u32 65535, %v971_v42  ;;  %v457_v2 = vshrl.u32 %v971_v42, 16 }
  0xde   :  { %v419_v28 = vsel %vm418_vm0, %v417_v26, 0 }
  0xdf   :  { %v421_v32 = vand.u32 31, %v419_v28  ;;  %v962_v41 = vshrl.u32 %v419_v28, 5 }
  0xe1   :  { %v960_v33 = vsub.s32 32, %v421_v32  ;;  %v424_v45 = vshll.u32 %v679_v44, %v421_v32  ;;  %v427_v48 = vshll.u32 %v680_v46, %v421_v32  ;;  %v430_v57 = vshll.u32 %v681_v52, %v421_v32 }
  0xe2   :  { %v433_v63 = vshll.u32 %v682_v58, %v421_v32  ;;  %v436_v8 = vshll.u32 %v683_v0, %v421_v32  ;;  %vm439_vm1 = vcmp.lt.s32.totalorder %v962_v41, 1  ;;  %vm442_vm2 = vcmp.lt.s32.totalorder %v962_v41, 4 }
  0xe3   :  { %v425_v51 = vshrl.u32 %v680_v46, %v960_v33  ;;  %v428_v54 = vshrl.u32 %v681_v52, %v960_v33  ;;  %v431_v60 = vshrl.u32 %v682_v58, %v960_v33  ;;  %v434_v1 = vshrl.u32 %v683_v0, %v960_v33 }
  0xe4   :  { %v437_v21 = vshrl.u32 %v684_v12, %v960_v33  ;;  %vm441_vm3 = vcmp.lt.s32.totalorder %v962_v41, 3  ;;  %vm440_vm4 = vcmp.lt.s32.totalorder %v962_v41, 2  ;;  %v423_v28 = vshrl.u32 %v679_v44, %v960_v33 }
  0xe5   :  { %v426_v31 = vor.u32 %v425_v51, %v424_v45  ;;  %v429_v34 = vor.u32 %v428_v54, %v427_v48  ;;  %v432_v35 = vor.u32 %v431_v60, %v430_v57  ;;  %v435_v36 = vor.u32 %v434_v1, %v433_v63 }
  0xe6   :  { %v438_v40 = vor.u32 %v437_v21, %v436_v8 }
  0xe7   :  { %v447_v47 = vsel %vm439_vm1, %v426_v31, %v429_v34  ;;  %v451_v49 = vsel %vm439_vm1, %v429_v34, %v432_v35  ;;  %v448_v50 = vsel %vm442_vm2, %v435_v36, 920167782  ;;  %v444_v24 = vsel %vm442_vm2, %v432_v35, 2102212464 }
  0xe8   :  { %v452_v53 = vsel %vm442_vm2, %v438_v40, 1326507024  ;;  %v449_v55 = vsel %vm441_vm3, %v432_v35, %v448_v50  ;;  %v443_v51 = vsel %vm439_vm1, %v423_v28, %v426_v31  ;;  %v445_v52 = vsel %vm441_vm3, %v429_v34, %v444_v24 }
  0xe9   :  { %v453_v56 = vsel %vm441_vm3, %v435_v36, %v452_v53  ;;  %v450_v59 = vsel %vm440_vm4, %v447_v47, %v449_v55  ;;  %v446_v33 = vsel %vm440_vm4, %v443_v51, %v445_v52  ;;  %vm550_vm1 = vweird.f32 %v954_v20 }
  0xea   :  { %v454_v61 = vsel %vm440_vm4, %v451_v49, %v453_v56  ;;  %v480_v13 = vand.u32 65535, %v450_v59  ;;  %v481_v29 = vshrl.u32 %v450_v59, 16  ;;  %v500_v8 = vmul.u32 %v971_v42, %v446_v33 }
  0xeb   :  { %v458_v6 = vand.u32 65535, %v454_v61  ;;  %v459_v7 = vshrl.u32 %v454_v61, 16 }
  0xec   :  { %v483_v38 = vmul.u32 %v481_v29, %v456_v62  ;;  %v484_v43 = vmul.u32 %v480_v13, %v457_v2  ;;  %v482_v9 = vmul.u32 %v480_v13, %v456_v62  ;;  %v485_v15 = vmul.u32 %v481_v29, %v457_v2 }
  0xed   :  { %v461_v30 = vmul.u32 %v459_v7, %v456_v62  ;;  %v462_v37 = vmul.u32 %v458_v6, %v457_v2  ;;  %v460_v3 = vmul.u32 %v458_v6, %v456_v62  ;;  %v463_v5 = vmul.u32 %v459_v7, %v457_v2 }
  0xee   :  { %v486_v10 = vshll.u32 %v483_v38, 16  ;;  %v488_v18 = vshll.u32 %v484_v43, 16  ;;  %v487_v46 = vshrl.u32 %v483_v38, 16  ;;  %v489_v58 = vshrl.u32 %v484_v43, 16 }
  0xef   :  { %v464_v4 = vshll.u32 %v461_v30, 16  ;;  %v466_v11 = vshll.u32 %v462_v37, 16  ;;  %v465_v32 = vshrl.u32 %v461_v30, 16  ;;  %v467_v54 = vshrl.u32 %v462_v37, 16 }
  0xf0   :  { %vm490_vm6 = vc.u32 %v482_v9, %v486_v10  ;;  %v492_v19 = vadd.s32 %v486_v10, %v482_v9 }
  0xf1   :  { %vm468_vm5 = vc.u32 %v460_v3, %v464_v4  ;;  %v470_v14 = vadd.s32 %v464_v4, %v460_v3  ;;  %v491_v23 = vsel %vm490_vm6, 1, %v685_v16 }
  0xf2   :  { %v469_v17 = vsel %vm468_vm5, 1, %v685_v16  ;;  %v493_v27 = vadd.s32 %v491_v23, %v485_v15  ;;  %vm494_vm8 = vc.u32 %v492_v19, %v488_v18  ;;  %v496_v0 = vadd.s32 %v492_v19, %v488_v18 }
  0xf3   :  { %v471_v22 = vadd.s32 %v469_v17, %v463_v5  ;;  %vm472_vm7 = vc.u32 %v470_v14, %v466_v11  ;;  %v495_v45 = vsel %vm494_vm8, 1, %v685_v16 }
  0xf4   :  { %v473_v26 = vsel %vm472_vm7, 1, %v685_v16  ;;  %v497_v48 = vadd.s32 %v495_v45, %v493_v27 }
  0xf5   :  { %v475_v39 = vadd.s32 %v473_v26, %v471_v22 }
  0xf6   :  { %v498_v60 = vadd.s32 %v497_v48, %v487_v46 }
  0xf7   :  { %v476_v57 = vadd.s32 %v475_v39, %v465_v32 }
  0xf8   :  { %v499_v44 = vadd.s32 %v498_v60, %v489_v58 }
  0xf9   :  { %v477_v63 = vadd.s32 %v476_v57, %v467_v54 }
  0xfa   :  { %v503_v1 = vadd.s32 1, %v499_v44 }
  0xfb   :  { %vm502_vm9 = vc.u32 %v477_v63, %v496_v0  ;;  %v501_v41 = vadd.s32 %v496_v0, %v477_v63 }
  0xfc   :  { %v504_v12 = vsel %vm502_vm9, %v503_v1, %v499_v44 }
  0xfd   :  { %v505_v21 = vadd.s32 %v504_v12, %v500_v8 }
  0xff   :  { %v506_v31 = vadd.s32 536870912, %v505_v21 }
 0x101   :  { %v507_v35 = vshrl.u32 %v506_v31, 30 }
 0x103   :  { %v508_v36 = vshll.u32 %v507_v35, 30  ;;  %v531_v43 = vsub.s32 4, %v507_v35 }
 0x105   :  { %v509_v34 = vsub.s32 %v505_v21, %v508_v36  ;;  %v532_v9 = vsel %vm409_vm12, %v531_v43, %v507_v35 }
 0x106   :  { %v534_v14 = vsel %vm408_vm13, 0, %v532_v9 }
 0x107   :  { %vm510_vm10 = vcmp.lt.s32.totalorder %v509_v34, 0  ;;  %v511_v40 = vsub.s32 0, %v509_v34  ;;  %v551_v19 = vadd.s32 3, %v534_v14 }
 0x109   :  { %v512_v47 = vsel %vm510_vm10, %v511_v40, %v509_v34  ;;  %v552_v26 = vand.u32 3, %v551_v19 }
 0x10a   :  { %v513_v49 = vclz %v512_v47 }
 0x10b   :  { %vm554_vm14 = vcmp.eq.s32.totalorder %v552_v26, 0  ;;  %vm557_vm15 = vcmp.eq.s32.totalorder %v552_v26, 2  ;;  %vm553_vm0 = vcmp.lt.s32.totalorder %v552_v26, 2 }
 0x10c   :  { %v582_v50 = vadd.s32 4294967294, %v513_v49 }
 0x10e   :  { %vm583_vm11 = vcmp.lt.s32.totalorder %v582_v50, 0 }
 0x10f   :  { %v516_v53 = vsel %vm583_vm11, 0, %v582_v50 }
 0x110   :  { %v517_v55 = vsub.s32 32, %v516_v53  ;;  %v521_v56 = vsub.s32 4294967266, %v516_v53  ;;  %v518_v59 = vshll.u32 %v509_v34, %v516_v53 }
 0x112   :  { %v519_v61 = vshrl.u32 %v501_v41, %v517_v55  ;;  %v522_v62 = vadd.s32 127, %v521_v56 }
 0x114   :  { %v520_v42 = vor.u32 %v519_v61, %v518_v59  ;;  %v523_v2 = vshll.u32 %v522_v62, 23 }
 0x116   :  { %v524_v6 = vor.u32 4788187, %v523_v2  ;;  %v527_v13 = vcvt.s32.f32 %v520_v42 }
 0x118   :  { %v525_v7 = vand.u32 2147483647, %v524_v6 }
 0x11a   :  { %v528_v29 = vmul.f32 %v527_v13, %v525_v7 }
 0x11c   :  { %v529_v30 = vxor.u32 2147483648, %v528_v29 }
 0x11e   :  { %v530_v37 = vsel %vm409_vm12, %v529_v30, %v528_v29 }
 0x11f   :  { %v533_v38 = vsel %vm408_vm13, %v954_v20, %v530_v37 }
 0x120   :  { %v535_v3 = vmul.f32 %v533_v38, %v533_v38 }
 0x122   :  { %v536_v4 = vmul.f32 -0.001358992, %v535_v3  ;;  %v543_v5 = vmul.f32 -0.00019511016, %v535_v3 }
 0x124   :  { %v537_v10 = vadd.f32 0.041655596, %v536_v4  ;;  %v544_v11 = vadd.f32 0.008332121, %v543_v5 }
 0x126   :  { %v538_v15 = vmul.f32 %v537_v10, %v535_v3  ;;  %v545_v16 = vmul.f32 %v544_v11, %v535_v3 }
 0x128   :  { %v539_v17 = vadd.f32 -0.4999988, %v538_v15  ;;  %v546_v18 = vadd.f32 -0.16666654, %v545_v16 }
 0x12a   :  { %v540_v22 = vmul.f32 %v539_v17, %v535_v3  ;;  %v547_v23 = vmul.f32 %v546_v18, %v535_v3 }
 0x12c   :  { %v541_v24 = vadd.f32 1.0, %v540_v22  ;;  %v548_v25 = vadd.f32 1.0, %v547_v23 }
 0x12e   :  { %v549_v27 = vmul.f32 %v548_v25, %v533_v38  ;;  %v558_v28 = vxor.u32 2147483648, %v541_v24 }
 0x130   :  { %v555_v32 = vxor.u32 2147483648, %v549_v27  ;;  %v559_v45 = vsel %vm557_vm15, %v558_v28, %v549_v27 }
 0x132   :  { %v556_v39 = vsel %vm554_vm14, %v541_v24, %v555_v32 }
 0x133   :  { %v560_v46 = vsel %vm553_vm0, %v556_v39, %v559_v45 }
 0x134   :  { %v561_v48 = vsel %vm550_vm1, nan, %v560_v46 }
 0x135   :  { %562 = vst [vmem:[#allocation7] sm:$0xff] %v561_v48 }
 0x136   :  { %573 = dma.vmem_to_hbm [thread:$0]  %s569_s24, 128, %s571_s27, [#allocation4]  }
 0x137   :  { %673 = dma.done.wait [#allocation4], 128  }
 0x138   :  { %674 = vsyncadd [#allocation4], 4294967168 }
 0x139   :  { %578 = vsyncpa [#allocation3], 1 }
 0x13a   :  { %579 = vsyncpa [#allocation6], 1 }
 0x13b   :  { %580 = vsyncpa [#allocation4], 1 }

</bundles_post_ra>
